<compile_context>
chip_gen: v5e
topology: v5e:2x2
jax: 0.10.0
libtpu: 0.0.40
codegen_flags: <defaults>
</compile_context>

<pallas_src>
import jax
import jax.numpy as jnp
from jax import lax
from jax.experimental import pallas as pl
from jax.experimental.pallas import tpu as pltpu

# ---- synthetic small BERT config (deterministic init, no checkpoint load) ----
VOCAB = 100
HIDDEN = 32
N_LAYERS = 2
N_HEADS = 2
HEAD_DIM = HIDDEN // N_HEADS
INTERMEDIATE = 64
MAX_POS = 16
LN_EPS = 1e-12
_SQRT_2_OVER_PI = 0.7978845608028654


# ---------------- in-kernel helpers (pure jnp on VMEM-resident values) ----------------
def _layernorm(x, g, b):
    # f32 statistics (do not move to bf16).
    mu = jnp.mean(x, axis=-1, keepdims=True)
    xc = x - mu
    var = jnp.mean(xc * xc, axis=-1, keepdims=True)
    return xc * lax.rsqrt(var + LN_EPS) * g + b


def _gelu_tanh(x):
    # tanh-approximate GELU (EUP tanh).  Not bit-identical to the erf GELU of
    # pytorch-pretrained-bert; acceptable for inference.
    return 0.5 * x * (1.0 + jnp.tanh(_SQRT_2_OVER_PI * (x + 0.044715 * x * x * x)))


# ---------------- fused encoder kernel (one grid step = one sequence x one layer) ----------------
def _encoder_kernel(we_ref, pe_ref, te_ref, eg_ref, eb_ref,
                    qkv_w_ref, qkv_b_ref, ao_w_ref, ao_b_ref,
                    ln1_g_ref, ln1_b_ref, i_w_ref, i_b_ref,
                    o_w_ref, o_b_ref, ln2_g_ref, ln2_b_ref,
                    pool_w_ref, pool_b_ref, out_ref, h_ref):
    H, Dh = HIDDEN, HEAD_DIM
    l = pl.program_id(1)
    scale = 1.0 / (Dh ** 0.5)

    # ---- layer 0: embedding sum + LayerNorm into the persistent VMEM carry ----
    @pl.when(l == 0)
    def _():
        emb = we_ref[...] + pe_ref[...] + te_ref[...]              # (S, H) f32
        h_ref[...] = _layernorm(emb, eg_ref[...], eb_ref[...])

    h = h_ref[...]                                                 # (S, H) f32
    hb = h.astype(jnp.bfloat16)

    # ---- self-attention ----
    # Fused QKV projection: one bf16 MXU pass (S, H) x (H, 3H) -> f32.
    qkv = (jnp.dot(hb, qkv_w_ref[...], preferred_element_type=jnp.float32)
           + qkv_b_ref[...])                                       # (S, 3H) f32

    qb = (qkv[:, 0:H] * scale).astype(jnp.bfloat16)                # (S, H)
    kb = qkv[:, H:2 * H].astype(jnp.bfloat16)
    vb = qkv[:, 2 * H:3 * H].astype(jnp.bfloat16)

    # TODO(synk): no additive attention mask (matches attention_mask=None);
    # padded batches would need the extended mask added to the scores here.
    ctx_heads = []
    for hd in range(N_HEADS):                       # heads: short static loop;
        sl = slice(hd * Dh, (hd + 1) * Dh)          # at real sizes -> grid axis
        s = jnp.dot(qb[:, sl], kb[:, sl].T,
                    preferred_element_type=jnp.float32)            # (S, S) f32
        s = s - jnp.max(s, axis=-1, keepdims=True)
        p = jnp.exp(s)
        p = p * pl.reciprocal(jnp.sum(p, axis=-1, keepdims=True), approx=True)
        ctx_heads.append(jnp.dot(p.astype(jnp.bfloat16), vb[:, sl],
                                 preferred_element_type=jnp.float32))
    # Flatten heads, then ONE full-K (S,H)x(H,H) output projection.
    ctx = jnp.concatenate(ctx_heads, axis=-1).astype(jnp.bfloat16)  # (S, H)
    attn = (jnp.dot(ctx, ao_w_ref[...], preferred_element_type=jnp.float32)
            + ao_b_ref[...])
    h1 = _layernorm(attn + h, ln1_g_ref[...], ln1_b_ref[...])

    # ---- FFN ----
    inter = (jnp.dot(h1.astype(jnp.bfloat16), i_w_ref[...],
                     preferred_element_type=jnp.float32) + i_b_ref[...])
    inter = _gelu_tanh(inter)
    ffn = (jnp.dot(inter.astype(jnp.bfloat16), o_w_ref[...],
                   preferred_element_type=jnp.float32) + o_b_ref[...])
    h2 = _layernorm(ffn + h1, ln2_g_ref[...], ln2_b_ref[...])
    h_ref[...] = h2

    # ---- last layer: pooler on the [CLS] row of this sequence ----
    @pl.when(l == pl.num_programs(1) - 1)
    def _():
        cls = h2[0:1, :]                                           # (1, H), row 0
        pooled = jnp.tanh(
            jnp.dot(cls.astype(jnp.bfloat16), pool_w_ref[...],
                    preferred_element_type=jnp.float32) + pool_b_ref[...])
        out_ref[...] = pooled.astype(out_ref.dtype)


# ---------------- parameter init (deterministic, synthetic) ----------------
def _normal(key, shape):
    return 0.02 * jax.random.normal(key, shape, dtype=jnp.float32)


def init_params(key):
    L = N_LAYERS
    ks = jax.random.split(key, 8)
    return dict(
        word_emb=_normal(ks[0], (VOCAB, HIDDEN)),
        pos_emb=_normal(ks[1], (MAX_POS, HIDDEN)),
        type_emb=_normal(ks[2], (2, HIDDEN)),
        emb_ln_g=jnp.ones((1, HIDDEN), jnp.float32),
        emb_ln_b=jnp.zeros((1, HIDDEN), jnp.float32),
        # Per-layer weights stacked along a leading layer axis; Q/K/V fused
        # (columns ordered [Q | K | V], each head-major within its H block).
        qkv_w=_normal(ks[3], (L, HIDDEN, 3 * HIDDEN)),
        qkv_b=jnp.zeros((L, 1, 3 * HIDDEN), jnp.float32),
        ao_w=_normal(ks[4], (L, HIDDEN, HIDDEN)),
        ao_b=jnp.zeros((L, 1, HIDDEN), jnp.float32),
        ln1_g=jnp.ones((L, 1, HIDDEN), jnp.float32),
        ln1_b=jnp.zeros((L, 1, HIDDEN), jnp.float32),
        i_w=_normal(ks[5], (L, HIDDEN, INTERMEDIATE)),
        i_b=jnp.zeros((L, 1, INTERMEDIATE), jnp.float32),
        o_w=_normal(ks[6], (L, INTERMEDIATE, HIDDEN)),
        o_b=jnp.zeros((L, 1, HIDDEN), jnp.float32),
        ln2_g=jnp.ones((L, 1, HIDDEN), jnp.float32),
        ln2_b=jnp.zeros((L, 1, HIDDEN), jnp.float32),
        pool_w=_normal(ks[7], (HIDDEN, HIDDEN)),
        pool_b=jnp.zeros((1, HIDDEN), jnp.float32),
    )


# ---------------- forward pass ----------------
def bert_encoder_forward(params, input_ids, token_type_ids=None):
    """Returns the pooled output y (shape [B, HIDDEN]) like `_, y = self.bert(x, ...)`."""
    B, S = input_ids.shape
    H, L = HIDDEN, N_LAYERS

    # Embedding table gathers stay in plain JAX glue (data-dependent lookup);
    # the positional/type adds + embedding LayerNorm happen inside the kernel.
    we = params["word_emb"][input_ids].reshape(B * S, H).astype(jnp.float32)
    pe = params["pos_emb"][:S].astype(jnp.float32)                 # (S, H)
    if token_type_ids is None:
        token_type_ids = jnp.zeros((B, S), jnp.int32)
    te = params["type_emb"][token_type_ids].reshape(B * S, H).astype(jnp.float32)

    bf = jnp.bfloat16
    inputs = [
        we, pe, te,
        params["emb_ln_g"], params["emb_ln_b"],
        params["qkv_w"].astype(bf), params["qkv_b"],
        params["ao_w"].astype(bf), params["ao_b"],
        params["ln1_g"], params["ln1_b"],
        params["i_w"].astype(bf), params["i_b"],
        params["o_w"].astype(bf), params["o_b"],
        params["ln2_g"], params["ln2_b"],
        params["pool_w"].astype(bf), params["pool_b"],
    ]

    def const2(b, l): return (0, 0)
    def perseq2(b, l): return (b, 0)
    def perlayer3(b, l): return (l, 0, 0)

    in_specs = [
        pl.BlockSpec((S, H), perseq2),                        # we  (per sequence)
        pl.BlockSpec((S, H), const2),                         # pe
        pl.BlockSpec((S, H), perseq2),                        # te  (per sequence)
        pl.BlockSpec((1, H), const2),                         # emb_ln_g
        pl.BlockSpec((1, H), const2),                         # emb_ln_b
        pl.BlockSpec((None, H, 3 * H), perlayer3),            # qkv_w (per layer)
        pl.BlockSpec((None, 1, 3 * H), perlayer3),            # qkv_b
        pl.BlockSpec((None, H, H), perlayer3),                # ao_w
        pl.BlockSpec((None, 1, H), perlayer3),                # ao_b
        pl.BlockSpec((None, 1, H), perlayer3),                # ln1_g
        pl.BlockSpec((None, 1, H), perlayer3),                # ln1_b
        pl.BlockSpec((None, H, INTERMEDIATE), perlayer3),     # i_w
        pl.BlockSpec((None, 1, INTERMEDIATE), perlayer3),     # i_b
        pl.BlockSpec((None, INTERMEDIATE, H), perlayer3),     # o_w
        pl.BlockSpec((None, 1, H), perlayer3),                # o_b
        pl.BlockSpec((None, 1, H), perlayer3),                # ln2_g
        pl.BlockSpec((None, 1, H), perlayer3),                # ln2_b
        pl.BlockSpec((H, H), const2),                         # pool_w
        pl.BlockSpec((1, H), const2),                         # pool_b
    ]

    out = pl.pallas_call(
        _encoder_kernel,
        out_shape=jax.ShapeDtypeStruct((B, 1, H), jnp.float32),
        # Grid: batch (independent sequences, 'parallel' -> both v7x TCs used)
        # x layers (sequential carry in VMEM scratch, 'arbitrary').
        grid=(B, L),
        in_specs=in_specs,
        out_specs=pl.BlockSpec((None, 1, H), lambda b, l: (b, 0, 0)),
        scratch_shapes=[pltpu.VMEM((S, H), jnp.float32)],     # activation carry
        compiler_params=pltpu.CompilerParams(
            dimension_semantics=("parallel", "arbitrary"),
            # Safe everywhere; raise toward 64-96 MiB (v5e/v6e) when tiles grow.
            vmem_limit_bytes=32 * 1024 * 1024,
        ),
    )(*inputs)
    return out.reshape(B, H)


if __name__ == "__main__":
    key = jax.random.PRNGKey(0)
    pkey, ikey = jax.random.split(key)
    params = init_params(pkey)

    B, S = 2, 8
    input_ids = jax.random.randint(ikey, (B, S), 0, VOCAB)

    y = jax.jit(lambda ids: bert_encoder_forward(params, ids))(input_ids)
    jax.block_until_ready(y)
    assert y.shape == (B, HIDDEN) and y.dtype == jnp.float32
    assert bool(jnp.all(jnp.isfinite(y)))
    print("KERNEL_OK")
</pallas_src>

<mosaic_0001>
module attributes {stable_mosaic.version = 11 : i64} {
  func.func @_encoder_kernel(%arg0: i32, %arg1: i32, %arg2: memref<8x32xf32, #tpu.memory_space<vmem>>, %arg3: memref<8x32xf32, #tpu.memory_space<vmem>>, %arg4: memref<8x32xf32, #tpu.memory_space<vmem>>, %arg5: memref<1x32xf32, #tpu.memory_space<vmem>>, %arg6: memref<1x32xf32, #tpu.memory_space<vmem>>, %arg7: memref<1x32x96xbf16, #tpu.memory_space<vmem>>, %arg8: memref<1x1x96xf32, #tpu.memory_space<vmem>>, %arg9: memref<1x32x32xbf16, #tpu.memory_space<vmem>>, %arg10: memref<1x1x32xf32, #tpu.memory_space<vmem>>, %arg11: memref<1x1x32xf32, #tpu.memory_space<vmem>>, %arg12: memref<1x1x32xf32, #tpu.memory_space<vmem>>, %arg13: memref<1x32x64xbf16, #tpu.memory_space<vmem>>, %arg14: memref<1x1x64xf32, #tpu.memory_space<vmem>>, %arg15: memref<1x64x32xbf16, #tpu.memory_space<vmem>>, %arg16: memref<1x1x32xf32, #tpu.memory_space<vmem>>, %arg17: memref<1x1x32xf32, #tpu.memory_space<vmem>>, %arg18: memref<1x1x32xf32, #tpu.memory_space<vmem>>, %arg19: memref<32x32xbf16, #tpu.memory_space<vmem>>, %arg20: memref<1x32xf32, #tpu.memory_space<vmem>>, %arg21: memref<1x1x32xf32, #tpu.memory_space<vmem>>, %arg22: memref<8x32xf32, #tpu.memory_space<vmem>>) attributes {dimension_semantics = [#tpu.dimension_semantics<parallel>, #tpu.dimension_semantics<arbitrary>], iteration_bounds = array<i64: 2, 2>, scalar_prefetch = 0 : i64, scratch_operands = 1 : i64, tpu.core_type = #tpu.core_type<tc>, window_params = [{transform_indices = @transform_0, window_bounds = array<i64: 8, 32>}, {pipeline_mode = #tpu.pipeline_mode<synchronous>, transform_indices = @transform_1, window_bounds = array<i64: 8, 32>}, {transform_indices = @transform_2, window_bounds = array<i64: 8, 32>}, {pipeline_mode = #tpu.pipeline_mode<synchronous>, transform_indices = @transform_3, window_bounds = array<i64: 1, 32>}, {pipeline_mode = #tpu.pipeline_mode<synchronous>, transform_indices = @transform_4, window_bounds = array<i64: 1, 32>}, {transform_indices = @transform_5, window_bounds = array<i64: 1, 32, 96>}, {transform_indices = @transform_6, window_bounds = array<i64: 1, 1, 96>}, {transform_indices = @transform_7, window_bounds = array<i64: 1, 32, 32>}, {transform_indices = @transform_8, window_bounds = array<i64: 1, 1, 32>}, {transform_indices = @transform_9, window_bounds = array<i64: 1, 1, 32>}, {transform_indices = @transform_10, window_bounds = array<i64: 1, 1, 32>}, {transform_indices = @transform_11, window_bounds = array<i64: 1, 32, 64>}, {transform_indices = @transform_12, window_bounds = array<i64: 1, 1, 64>}, {transform_indices = @transform_13, window_bounds = array<i64: 1, 64, 32>}, {transform_indices = @transform_14, window_bounds = array<i64: 1, 1, 32>}, {transform_indices = @transform_15, window_bounds = array<i64: 1, 1, 32>}, {transform_indices = @transform_16, window_bounds = array<i64: 1, 1, 32>}, {pipeline_mode = #tpu.pipeline_mode<synchronous>, transform_indices = @transform_17, window_bounds = array<i64: 32, 32>}, {pipeline_mode = #tpu.pipeline_mode<synchronous>, transform_indices = @transform_18, window_bounds = array<i64: 1, 32>}, {transform_indices = @transform_19, window_bounds = array<i64: 1, 1, 32>}]} {
    %c0_i32 = arith.constant 0 : i32
    %0 = arith.cmpi eq, %arg1, %c0_i32 : i32
    %1 = arith.extui %0 : i1 to i32
    %c0_i32_0 = arith.constant 0 : i32
    %2 = arith.cmpi ne, %1, %c0_i32_0 : i32
    scf.if %2 {
      %c0_67 = arith.constant 0 : index
      %c0_68 = arith.constant 0 : index
      %146 = vector.load %arg2[%c0_67, %c0_68] : memref<8x32xf32, #tpu.memory_space<vmem>>, vector<8x32xf32>
      %c0_69 = arith.constant 0 : index
      %c0_70 = arith.constant 0 : index
      %147 = vector.load %arg3[%c0_69, %c0_70] : memref<8x32xf32, #tpu.memory_space<vmem>>, vector<8x32xf32>
      %148 = arith.addf %146, %147 : vector<8x32xf32>
      %c0_71 = arith.constant 0 : index
      %c0_72 = arith.constant 0 : index
      %149 = vector.load %arg4[%c0_71, %c0_72] : memref<8x32xf32, #tpu.memory_space<vmem>>, vector<8x32xf32>
      %150 = arith.addf %148, %149 : vector<8x32xf32>
      %c0_73 = arith.constant 0 : index
      %c0_74 = arith.constant 0 : index
      %151 = vector.load %arg5[%c0_73, %c0_74] : memref<1x32xf32, #tpu.memory_space<vmem>>, vector<1x32xf32>
      %c0_75 = arith.constant 0 : index
      %c0_76 = arith.constant 0 : index
      %152 = vector.load %arg6[%c0_75, %c0_76] : memref<1x32xf32, #tpu.memory_space<vmem>>, vector<1x32xf32>
      %cst_77 = arith.constant dense<0.000000e+00> : vector<8xf32>
      %153 = vector.multi_reduction <add>, %150, %cst_77 [1] : vector<8x32xf32> to vector<8xf32>
      %154 = vector.shape_cast %153 : vector<8xf32> to vector<8x1xf32>
      %cst_78 = arith.constant 3.200000e+01 : f32
      %155 = vector.broadcast %cst_78 : f32 to vector<8x1xf32>
      %156 = arith.divf %154, %155 : vector<8x1xf32>
      %157 = vector.broadcast %156 : vector<8x1xf32> to vector<8x32xf32>
      %158 = arith.subf %150, %157 : vector<8x32xf32>
      %159 = arith.mulf %158, %158 : vector<8x32xf32>
      %cst_79 = arith.constant dense<0.000000e+00> : vector<8xf32>
      %160 = vector.multi_reduction <add>, %159, %cst_79 [1] : vector<8x32xf32> to vector<8xf32>
      %161 = vector.shape_cast %160 : vector<8xf32> to vector<8x1xf32>
      %cst_80 = arith.constant 3.200000e+01 : f32
      %162 = vector.broadcast %cst_80 : f32 to vector<8x1xf32>
      %163 = arith.divf %161, %162 : vector<8x1xf32>
      %cst_81 = arith.constant 9.99999996E-13 : f32
      %164 = vector.broadcast %cst_81 : f32 to vector<8x1xf32>
      %165 = arith.addf %163, %164 : vector<8x1xf32>
      %166 = math.rsqrt %165 : vector<8x1xf32>
      %167 = vector.broadcast %166 : vector<8x1xf32> to vector<8x32xf32>
      %168 = arith.mulf %158, %167 : vector<8x32xf32>
      %169 = vector.broadcast %151 : vector<1x32xf32> to vector<8x32xf32>
      %170 = arith.mulf %168, %169 : vector<8x32xf32>
      %171 = vector.broadcast %152 : vector<1x32xf32> to vector<8x32xf32>
      %172 = arith.addf %170, %171 : vector<8x32xf32>
      %c0_82 = arith.constant 0 : index
      %c0_83 = arith.constant 0 : index
      %173 = vector.load %arg22[%c0_82, %c0_83] : memref<8x32xf32, #tpu.memory_space<vmem>>, vector<8x32xf32>
      tpu.vector_store %arg22[%c0_82, %c0_83], %172 {strides = array<i32>} : memref<8x32xf32, #tpu.memory_space<vmem>>, vector<8x32xf32>,
    } else {
    }
    %c0 = arith.constant 0 : index
    %c0_1 = arith.constant 0 : index
    %3 = vector.load %arg22[%c0, %c0_1] : memref<8x32xf32, #tpu.memory_space<vmem>>, vector<8x32xf32>
    %4 = arith.truncf %3 : vector<8x32xf32> to vector<8x32xbf16>
    %c0_2 = arith.constant 0 : index
    %c0_3 = arith.constant 0 : index
    %c0_4 = arith.constant 0 : index
    %5 = vector.load %arg7[%c0_2, %c0_3, %c0_4] : memref<1x32x96xbf16, #tpu.memory_space<vmem>>, vector<1x32x96xbf16>
    %6 = vector.shape_cast %5 : vector<1x32x96xbf16> to vector<32x96xbf16>
    %cst = arith.constant dense<0.000000e+00> : vector<8x96xf32>
    %7 = tpu.matmul %4, %6, %cst {dimension_numbers = #tpu.dot_dimension_numbers<[1], [0], [0], [1], [0, 0, 1, 1], [], []>} : vector<8x32xbf16>, vector<32x96xbf16>, vector<8x96xf32> -> vector<8x96xf32>
    %c0_5 = arith.constant 0 : index
    %c0_6 = arith.constant 0 : index
    %c0_7 = arith.constant 0 : index
    %8 = vector.load %arg8[%c0_5, %c0_6, %c0_7] : memref<1x1x96xf32, #tpu.memory_space<vmem>>, vector<1x1x96xf32>
    %9 = vector.shape_cast %8 : vector<1x1x96xf32> to vector<1x96xf32>
    %10 = vector.broadcast %9 : vector<1x96xf32> to vector<8x96xf32>
    %11 = arith.addf %7, %10 : vector<8x96xf32>
    %12 = vector.extract_strided_slice %11 {offsets = [0, 0], sizes = [8, 32], strides = [1, 1]} : vector<8x96xf32> to vector<8x32xf32>
    %cst_8 = arith.constant 2.500000e-01 : f32
    %13 = vector.broadcast %cst_8 : f32 to vector<8x32xf32>
    %14 = arith.mulf %12, %13 : vector<8x32xf32>
    %15 = arith.truncf %14 : vector<8x32xf32> to vector<8x32xbf16>
    %16 = vector.extract_strided_slice %11 {offsets = [0, 32], sizes = [8, 32], strides = [1, 1]} : vector<8x96xf32> to vector<8x32xf32>
    %17 = arith.truncf %16 : vector<8x32xf32> to vector<8x32xbf16>
    %18 = vector.extract_strided_slice %11 {offsets = [0, 64], sizes = [8, 32], strides = [1, 1]} : vector<8x96xf32> to vector<8x32xf32>
    %19 = arith.truncf %18 : vector<8x32xf32> to vector<8x32xbf16>
    %20 = vector.extract_strided_slice %15 {offsets = [0, 0], sizes = [8, 16], strides = [1, 1]} : vector<8x32xbf16> to vector<8x16xbf16>
    %21 = vector.extract_strided_slice %17 {offsets = [0, 0], sizes = [8, 16], strides = [1, 1]} : vector<8x32xbf16> to vector<8x16xbf16>
    %22 = tpu.transpose %21, [1, 0] : vector<8x16xbf16> -> vector<16x8xbf16>
    %cst_9 = arith.constant dense<0.000000e+00> : vector<8x8xf32>
    %23 = tpu.matmul %20, %22, %cst_9 {dimension_numbers = #tpu.dot_dimension_numbers<[1], [0], [0], [1], [0, 0, 1, 1], [], []>} : vector<8x16xbf16>, vector<16x8xbf16>, vector<8x8xf32> -> vector<8x8xf32>
    %cst_10 = arith.constant dense<0xFF800000> : vector<8xf32>
    %24 = vector.multi_reduction <maximumf>, %23, %cst_10 [1] : vector<8x8xf32> to vector<8xf32>
    %25 = vector.shape_cast %24 : vector<8xf32> to vector<8x1xf32>
    %26 = vector.broadcast %25 : vector<8x1xf32> to vector<8x8xf32>
    %27 = arith.subf %23, %26 : vector<8x8xf32>
    %28 = math.exp %27 : vector<8x8xf32>
    %cst_11 = arith.constant dense<0.000000e+00> : vector<8xf32>
    %29 = vector.multi_reduction <add>, %28, %cst_11 [1] : vector<8x8xf32> to vector<8xf32>
    %30 = vector.shape_cast %29 : vector<8xf32> to vector<8x1xf32>
    %31 = tpu.reciprocal %30 {approx = true} : vector<8x1xf32> -> vector<8x1xf32>
    %32 = vector.broadcast %31 : vector<8x1xf32> to vector<8x8xf32>
    %33 = arith.mulf %28, %32 : vector<8x8xf32>
    %34 = arith.truncf %33 : vector<8x8xf32> to vector<8x8xbf16>
    %35 = vector.extract_strided_slice %19 {offsets = [0, 0], sizes = [8, 16], strides = [1, 1]} : vector<8x32xbf16> to vector<8x16xbf16>
    %cst_12 = arith.constant dense<0.000000e+00> : vector<8x16xf32>
    %36 = tpu.matmul %34, %35, %cst_12 {dimension_numbers = #tpu.dot_dimension_numbers<[1], [0], [0], [1], [0, 0, 1, 1], [], []>} : vector<8x8xbf16>, vector<8x16xbf16>, vector<8x16xf32> -> vector<8x16xf32>
    %37 = vector.extract_strided_slice %15 {offsets = [0, 16], sizes = [8, 16], strides = [1, 1]} : vector<8x32xbf16> to vector<8x16xbf16>
    %38 = vector.extract_strided_slice %17 {offsets = [0, 16], sizes = [8, 16], strides = [1, 1]} : vector<8x32xbf16> to vector<8x16xbf16>
    %39 = tpu.transpose %38, [1, 0] : vector<8x16xbf16> -> vector<16x8xbf16>
    %cst_13 = arith.constant dense<0.000000e+00> : vector<8x8xf32>
    %40 = tpu.matmul %37, %39, %cst_13 {dimension_numbers = #tpu.dot_dimension_numbers<[1], [0], [0], [1], [0, 0, 1, 1], [], []>} : vector<8x16xbf16>, vector<16x8xbf16>, vector<8x8xf32> -> vector<8x8xf32>
    %cst_14 = arith.constant dense<0xFF800000> : vector<8xf32>
    %41 = vector.multi_reduction <maximumf>, %40, %cst_14 [1] : vector<8x8xf32> to vector<8xf32>
    %42 = vector.shape_cast %41 : vector<8xf32> to vector<8x1xf32>
    %43 = vector.broadcast %42 : vector<8x1xf32> to vector<8x8xf32>
    %44 = arith.subf %40, %43 : vector<8x8xf32>
    %45 = math.exp %44 : vector<8x8xf32>
    %cst_15 = arith.constant dense<0.000000e+00> : vector<8xf32>
    %46 = vector.multi_reduction <add>, %45, %cst_15 [1] : vector<8x8xf32> to vector<8xf32>
    %47 = vector.shape_cast %46 : vector<8xf32> to vector<8x1xf32>
    %48 = tpu.reciprocal %47 {approx = true} : vector<8x1xf32> -> vector<8x1xf32>
    %49 = vector.broadcast %48 : vector<8x1xf32> to vector<8x8xf32>
    %50 = arith.mulf %45, %49 : vector<8x8xf32>
    %51 = arith.truncf %50 : vector<8x8xf32> to vector<8x8xbf16>
    %52 = vector.extract_strided_slice %19 {offsets = [0, 16], sizes = [8, 16], strides = [1, 1]} : vector<8x32xbf16> to vector<8x16xbf16>
    %cst_16 = arith.constant dense<0.000000e+00> : vector<8x16xf32>
    %53 = tpu.matmul %51, %52, %cst_16 {dimension_numbers = #tpu.dot_dimension_numbers<[1], [0], [0], [1], [0, 0, 1, 1], [], []>} : vector<8x8xbf16>, vector<8x16xbf16>, vector<8x16xf32> -> vector<8x16xf32>
    %54 = tpu.concatenate %36, %53 in 1 : vector<8x16xf32>, vector<8x16xf32> -> vector<8x32xf32>
    %55 = arith.truncf %54 : vector<8x32xf32> to vector<8x32xbf16>
    %c0_17 = arith.constant 0 : index
    %c0_18 = arith.constant 0 : index
    %c0_19 = arith.constant 0 : index
    %56 = vector.load %arg9[%c0_17, %c0_18, %c0_19] : memref<1x32x32xbf16, #tpu.memory_space<vmem>>, vector<1x32x32xbf16>
    %57 = vector.shape_cast %56 : vector<1x32x32xbf16> to vector<32x32xbf16>
    %cst_20 = arith.constant dense<0.000000e+00> : vector<8x32xf32>
    %58 = tpu.matmul %55, %57, %cst_20 {dimension_numbers = #tpu.dot_dimension_numbers<[1], [0], [0], [1], [0, 0, 1, 1], [], []>} : vector<8x32xbf16>, vector<32x32xbf16>, vector<8x32xf32> -> vector<8x32xf32>
    %c0_21 = arith.constant 0 : index
    %c0_22 = arith.constant 0 : index
    %c0_23 = arith.constant 0 : index
    %59 = vector.load %arg10[%c0_21, %c0_22, %c0_23] : memref<1x1x32xf32, #tpu.memory_space<vmem>>, vector<1x1x32xf32>
    %60 = vector.shape_cast %59 : vector<1x1x32xf32> to vector<1x32xf32>
    %61 = vector.broadcast %60 : vector<1x32xf32> to vector<8x32xf32>
    %62 = arith.addf %58, %61 : vector<8x32xf32>
    %63 = arith.addf %62, %3 : vector<8x32xf32>
    %c0_24 = arith.constant 0 : index
    %c0_25 = arith.constant 0 : index
    %c0_26 = arith.constant 0 : index
    %64 = vector.load %arg11[%c0_24, %c0_25, %c0_26] : memref<1x1x32xf32, #tpu.memory_space<vmem>>, vector<1x1x32xf32>
    %65 = vector.shape_cast %64 : vector<1x1x32xf32> to vector<1x32xf32>
    %c0_27 = arith.constant 0 : index
    %c0_28 = arith.constant 0 : index
    %c0_29 = arith.constant 0 : index
    %66 = vector.load %arg12[%c0_27, %c0_28, %c0_29] : memref<1x1x32xf32, #tpu.memory_space<vmem>>, vector<1x1x32xf32>
    %67 = vector.shape_cast %66 : vector<1x1x32xf32> to vector<1x32xf32>
    %cst_30 = arith.constant dense<0.000000e+00> : vector<8xf32>
    %68 = vector.multi_reduction <add>, %63, %cst_30 [1] : vector<8x32xf32> to vector<8xf32>
    %69 = vector.shape_cast %68 : vector<8xf32> to vector<8x1xf32>
    %cst_31 = arith.constant 3.200000e+01 : f32
    %70 = vector.broadcast %cst_31 : f32 to vector<8x1xf32>
    %71 = arith.divf %69, %70 : vector<8x1xf32>
    %72 = vector.broadcast %71 : vector<8x1xf32> to vector<8x32xf32>
    %73 = arith.subf %63, %72 : vector<8x32xf32>
    %74 = arith.mulf %73, %73 : vector<8x32xf32>
    %cst_32 = arith.constant dense<0.000000e+00> : vector<8xf32>
    %75 = vector.multi_reduction <add>, %74, %cst_32 [1] : vector<8x32xf32> to vector<8xf32>
    %76 = vector.shape_cast %75 : vector<8xf32> to vector<8x1xf32>
    %cst_33 = arith.constant 3.200000e+01 : f32
    %77 = vector.broadcast %cst_33 : f32 to vector<8x1xf32>
    %78 = arith.divf %76, %77 : vector<8x1xf32>
    %cst_34 = arith.constant 9.99999996E-13 : f32
    %79 = vector.broadcast %cst_34 : f32 to vector<8x1xf32>
    %80 = arith.addf %78, %79 : vector<8x1xf32>
    %81 = math.rsqrt %80 : vector<8x1xf32>
    %82 = vector.broadcast %81 : vector<8x1xf32> to vector<8x32xf32>
    %83 = arith.mulf %73, %82 : vector<8x32xf32>
    %84 = vector.broadcast %65 : vector<1x32xf32> to vector<8x32xf32>
    %85 = arith.mulf %83, %84 : vector<8x32xf32>
    %86 = vector.broadcast %67 : vector<1x32xf32> to vector<8x32xf32>
    %87 = arith.addf %85, %86 : vector<8x32xf32>
    %88 = arith.truncf %87 : vector<8x32xf32> to vector<8x32xbf16>
    %c0_35 = arith.constant 0 : index
    %c0_36 = arith.constant 0 : index
    %c0_37 = arith.constant 0 : index
    %89 = vector.load %arg13[%c0_35, %c0_36, %c0_37] : memref<1x32x64xbf16, #tpu.memory_space<vmem>>, vector<1x32x64xbf16>
    %90 = vector.shape_cast %89 : vector<1x32x64xbf16> to vector<32x64xbf16>
    %cst_38 = arith.constant dense<0.000000e+00> : vector<8x64xf32>
    %91 = tpu.matmul %88, %90, %cst_38 {dimension_numbers = #tpu.dot_dimension_numbers<[1], [0], [0], [1], [0, 0, 1, 1], [], []>} : vector<8x32xbf16>, vector<32x64xbf16>, vector<8x64xf32> -> vector<8x64xf32>
    %c0_39 = arith.constant 0 : index
    %c0_40 = arith.constant 0 : index
    %c0_41 = arith.constant 0 : index
    %92 = vector.load %arg14[%c0_39, %c0_40, %c0_41] : memref<1x1x64xf32, #tpu.memory_space<vmem>>, vector<1x1x64xf32>
    %93 = vector.shape_cast %92 : vector<1x1x64xf32> to vector<1x64xf32>
    %94 = vector.broadcast %93 : vector<1x64xf32> to vector<8x64xf32>
    %95 = arith.addf %91, %94 : vector<8x64xf32>
    %cst_42 = arith.constant 5.000000e-01 : f32
    %96 = vector.broadcast %cst_42 : f32 to vector<8x64xf32>
    %97 = arith.mulf %96, %95 : vector<8x64xf32>
    %cst_43 = arith.constant 4.471500e-02 : f32
    %98 = vector.broadcast %cst_43 : f32 to vector<8x64xf32>
    %99 = arith.mulf %98, %95 : vector<8x64xf32>
    %100 = arith.mulf %99, %95 : vector<8x64xf32>
    %101 = arith.mulf %100, %95 : vector<8x64xf32>
    %102 = arith.addf %95, %101 : vector<8x64xf32>
    %cst_44 = arith.constant 0.797884583 : f32
    %103 = vector.broadcast %cst_44 : f32 to vector<8x64xf32>
    %104 = arith.mulf %103, %102 : vector<8x64xf32>
    %105 = math.tanh %104 : vector<8x64xf32>
    %cst_45 = arith.constant 1.000000e+00 : f32
    %106 = vector.broadcast %cst_45 : f32 to vector<8x64xf32>
    %107 = arith.addf %106, %105 : vector<8x64xf32>
    %108 = arith.mulf %97, %107 : vector<8x64xf32>
    %109 = arith.truncf %108 : vector<8x64xf32> to vector<8x64xbf16>
    %c0_46 = arith.constant 0 : index
    %c0_47 = arith.constant 0 : index
    %c0_48 = arith.constant 0 : index
    %110 = vector.load %arg15[%c0_46, %c0_47, %c0_48] : memref<1x64x32xbf16, #tpu.memory_space<vmem>>, vector<1x64x32xbf16>
    %111 = vector.shape_cast %110 : vector<1x64x32xbf16> to vector<64x32xbf16>
    %cst_49 = arith.constant dense<0.000000e+00> : vector<8x32xf32>
    %112 = tpu.matmul %109, %111, %cst_49 {dimension_numbers = #tpu.dot_dimension_numbers<[1], [0], [0], [1], [0, 0, 1, 1], [], []>} : vector<8x64xbf16>, vector<64x32xbf16>, vector<8x32xf32> -> vector<8x32xf32>
    %c0_50 = arith.constant 0 : index
    %c0_51 = arith.constant 0 : index
    %c0_52 = arith.constant 0 : index
    %113 = vector.load %arg16[%c0_50, %c0_51, %c0_52] : memref<1x1x32xf32, #tpu.memory_space<vmem>>, vector<1x1x32xf32>
    %114 = vector.shape_cast %113 : vector<1x1x32xf32> to vector<1x32xf32>
    %115 = vector.broadcast %114 : vector<1x32xf32> to vector<8x32xf32>
    %116 = arith.addf %112, %115 : vector<8x32xf32>
    %117 = arith.addf %116, %87 : vector<8x32xf32>
    %c0_53 = arith.constant 0 : index
    %c0_54 = arith.constant 0 : index
    %c0_55 = arith.constant 0 : index
    %118 = vector.load %arg17[%c0_53, %c0_54, %c0_55] : memref<1x1x32xf32, #tpu.memory_space<vmem>>, vector<1x1x32xf32>
    %119 = vector.shape_cast %118 : vector<1x1x32xf32> to vector<1x32xf32>
    %c0_56 = arith.constant 0 : index
    %c0_57 = arith.constant 0 : index
    %c0_58 = arith.constant 0 : index
    %120 = vector.load %arg18[%c0_56, %c0_57, %c0_58] : memref<1x1x32xf32, #tpu.memory_space<vmem>>, vector<1x1x32xf32>
    %121 = vector.shape_cast %120 : vector<1x1x32xf32> to vector<1x32xf32>
    %cst_59 = arith.constant dense<0.000000e+00> : vector<8xf32>
    %122 = vector.multi_reduction <add>, %117, %cst_59 [1] : vector<8x32xf32> to vector<8xf32>
    %123 = vector.shape_cast %122 : vector<8xf32> to vector<8x1xf32>
    %cst_60 = arith.constant 3.200000e+01 : f32
    %124 = vector.broadcast %cst_60 : f32 to vector<8x1xf32>
    %125 = arith.divf %123, %124 : vector<8x1xf32>
    %126 = vector.broadcast %125 : vector<8x1xf32> to vector<8x32xf32>
    %127 = arith.subf %117, %126 : vector<8x32xf32>
    %128 = arith.mulf %127, %127 : vector<8x32xf32>
    %cst_61 = arith.constant dense<0.000000e+00> : vector<8xf32>
    %129 = vector.multi_reduction <add>, %128, %cst_61 [1] : vector<8x32xf32> to vector<8xf32>
    %130 = vector.shape_cast %129 : vector<8xf32> to vector<8x1xf32>
    %cst_62 = arith.constant 3.200000e+01 : f32
    %131 = vector.broadcast %cst_62 : f32 to vector<8x1xf32>
    %132 = arith.divf %130, %131 : vector<8x1xf32>
    %cst_63 = arith.constant 9.99999996E-13 : f32
    %133 = vector.broadcast %cst_63 : f32 to vector<8x1xf32>
    %134 = arith.addf %132, %133 : vector<8x1xf32>
    %135 = math.rsqrt %134 : vector<8x1xf32>
    %136 = vector.broadcast %135 : vector<8x1xf32> to vector<8x32xf32>
    %137 = arith.mulf %127, %136 : vector<8x32xf32>
    %138 = vector.broadcast %119 : vector<1x32xf32> to vector<8x32xf32>
    %139 = arith.mulf %137, %138 : vector<8x32xf32>
    %140 = vector.broadcast %121 : vector<1x32xf32> to vector<8x32xf32>
    %141 = arith.addf %139, %140 : vector<8x32xf32>
    %c0_64 = arith.constant 0 : index
    %c0_65 = arith.constant 0 : index
    %142 = vector.load %arg22[%c0_64, %c0_65] : memref<8x32xf32, #tpu.memory_space<vmem>>, vector<8x32xf32>
    tpu.vector_store %arg22[%c0_64, %c0_65], %141 {strides = array<i32>} : memref<8x32xf32, #tpu.memory_space<vmem>>, vector<8x32xf32>,
    %c1_i32 = arith.constant 1 : i32
    %143 = arith.cmpi eq, %arg1, %c1_i32 : i32
    %144 = arith.extui %143 : i1 to i32
    %c0_i32_66 = arith.constant 0 : i32
    %145 = arith.cmpi ne, %144, %c0_i32_66 : i32
    scf.if %145 {
      %146 = vector.extract_strided_slice %141 {offsets = [0, 0], sizes = [1, 32], strides = [1, 1]} : vector<8x32xf32> to vector<1x32xf32>
      %147 = arith.truncf %146 : vector<1x32xf32> to vector<1x32xbf16>
      %c0_67 = arith.constant 0 : index
      %c0_68 = arith.constant 0 : index
      %148 = vector.load %arg19[%c0_67, %c0_68] : memref<32x32xbf16, #tpu.memory_space<vmem>>, vector<32x32xbf16>
      %cst_69 = arith.constant dense<0.000000e+00> : vector<1x32xf32>
      %149 = tpu.matmul %147, %148, %cst_69 {dimension_numbers = #tpu.dot_dimension_numbers<[1], [0], [0], [1], [0, 0, 1, 1], [], []>} : vector<1x32xbf16>, vector<32x32xbf16>, vector<1x32xf32> -> vector<1x32xf32>
      %c0_70 = arith.constant 0 : index
      %c0_71 = arith.constant 0 : index
      %150 = vector.load %arg20[%c0_70, %c0_71] : memref<1x32xf32, #tpu.memory_space<vmem>>, vector<1x32xf32>
      %151 = arith.addf %149, %150 : vector<1x32xf32>
      %152 = math.tanh %151 : vector<1x32xf32>
      %c0_72 = arith.constant 0 : index
      %c0_73 = arith.constant 0 : index
      %c0_74 = arith.constant 0 : index
      %153 = vector.load %arg21[%c0_72, %c0_73, %c0_74] : memref<1x1x32xf32, #tpu.memory_space<vmem>>, vector<1x1x32xf32>
      %154 = vector.shape_cast %153 : vector<1x1x32xf32> to vector<1x32xf32>
      %155 = vector.shape_cast %152 : vector<1x32xf32> to vector<1x1x32xf32>
      tpu.vector_store %arg21[%c0_72, %c0_73, %c0_74], %155 {strides = array<i32>} : memref<1x1x32xf32, #tpu.memory_space<vmem>>, vector<1x1x32xf32>,
    } else {
    }
    return
  }
  func.func @transform_0(%arg0: i32, %arg1: i32) -> (i32, i32) {
    %c0_i32 = arith.constant 0 : i32
    %c0_i32_0 = arith.constant 0 : i32
    return %arg0, %c0_i32 : i32, i32
  }
  func.func @transform_1(%arg0: i32, %arg1: i32) -> (i32, i32) {
    %c0_i32 = arith.constant 0 : i32
    %c0_i32_0 = arith.constant 0 : i32
    %c0_i32_1 = arith.constant 0 : i32
    return %c0_i32, %c0_i32_0 : i32, i32
  }
  func.func @transform_2(%arg0: i32, %arg1: i32) -> (i32, i32) {
    %c0_i32 = arith.constant 0 : i32
    %c0_i32_0 = arith.constant 0 : i32
    return %arg0, %c0_i32 : i32, i32
  }
  func.func @transform_3(%arg0: i32, %arg1: i32) -> (i32, i32) {
    %c0_i32 = arith.constant 0 : i32
    %c0_i32_0 = arith.constant 0 : i32
    %c0_i32_1 = arith.constant 0 : i32
    return %c0_i32, %c0_i32_0 : i32, i32
  }
  func.func @transform_4(%arg0: i32, %arg1: i32) -> (i32, i32) {
    %c0_i32 = arith.constant 0 : i32
    %c0_i32_0 = arith.constant 0 : i32
    %c0_i32_1 = arith.constant 0 : i32
    return %c0_i32, %c0_i32_0 : i32, i32
  }
  func.func @transform_5(%arg0: i32, %arg1: i32) -> (i32, i32, i32) {
    %c0_i32 = arith.constant 0 : i32
    %c0_i32_0 = arith.constant 0 : i32
    %c0_i32_1 = arith.constant 0 : i32
    return %arg1, %c0_i32, %c0_i32_0 : i32, i32, i32
  }
  func.func @transform_6(%arg0: i32, %arg1: i32) -> (i32, i32, i32) {
    %c0_i32 = arith.constant 0 : i32
    %c0_i32_0 = arith.constant 0 : i32
    %c0_i32_1 = arith.constant 0 : i32
    return %arg1, %c0_i32, %c0_i32_0 : i32, i32, i32
  }
  func.func @transform_7(%arg0: i32, %arg1: i32) -> (i32, i32, i32) {
    %c0_i32 = arith.constant 0 : i32
    %c0_i32_0 = arith.constant 0 : i32
    %c0_i32_1 = arith.constant 0 : i32
    return %arg1, %c0_i32, %c0_i32_0 : i32, i32, i32
  }
  func.func @transform_8(%arg0: i32, %arg1: i32) -> (i32, i32, i32) {
    %c0_i32 = arith.constant 0 : i32
    %c0_i32_0 = arith.constant 0 : i32
    %c0_i32_1 = arith.constant 0 : i32
    return %arg1, %c0_i32, %c0_i32_0 : i32, i32, i32
  }
  func.func @transform_9(%arg0: i32, %arg1: i32) -> (i32, i32, i32) {
    %c0_i32 = arith.constant 0 : i32
    %c0_i32_0 = arith.constant 0 : i32
    %c0_i32_1 = arith.constant 0 : i32
    return %arg1, %c0_i32, %c0_i32_0 : i32, i32, i32
  }
  func.func @transform_10(%arg0: i32, %arg1: i32) -> (i32, i32, i32) {
    %c0_i32 = arith.constant 0 : i32
    %c0_i32_0 = arith.constant 0 : i32
    %c0_i32_1 = arith.constant 0 : i32
    return %arg1, %c0_i32, %c0_i32_0 : i32, i32, i32
  }
  func.func @transform_11(%arg0: i32, %arg1: i32) -> (i32, i32, i32) {
    %c0_i32 = arith.constant 0 : i32
    %c0_i32_0 = arith.constant 0 : i32
    %c0_i32_1 = arith.constant 0 : i32
    return %arg1, %c0_i32, %c0_i32_0 : i32, i32, i32
  }
  func.func @transform_12(%arg0: i32, %arg1: i32) -> (i32, i32, i32) {
    %c0_i32 = arith.constant 0 : i32
    %c0_i32_0 = arith.constant 0 : i32
    %c0_i32_1 = arith.constant 0 : i32
    return %arg1, %c0_i32, %c0_i32_0 : i32, i32, i32
  }
  func.func @transform_13(%arg0: i32, %arg1: i32) -> (i32, i32, i32) {
    %c0_i32 = arith.constant 0 : i32
    %c0_i32_0 = arith.constant 0 : i32
    %c0_i32_1 = arith.constant 0 : i32
    return %arg1, %c0_i32, %c0_i32_0 : i32, i32, i32
  }
  func.func @transform_14(%arg0: i32, %arg1: i32) -> (i32, i32, i32) {
    %c0_i32 = arith.constant 0 : i32
    %c0_i32_0 = arith.constant 0 : i32
    %c0_i32_1 = arith.constant 0 : i32
    return %arg1, %c0_i32, %c0_i32_0 : i32, i32, i32
  }
  func.func @transform_15(%arg0: i32, %arg1: i32) -> (i32, i32, i32) {
    %c0_i32 = arith.constant 0 : i32
    %c0_i32_0 = arith.constant 0 : i32
    %c0_i32_1 = arith.constant 0 : i32
    return %arg1, %c0_i32, %c0_i32_0 : i32, i32, i32
  }
  func.func @transform_16(%arg0: i32, %arg1: i32) -> (i32, i32, i32) {
    %c0_i32 = arith.constant 0 : i32
    %c0_i32_0 = arith.constant 0 : i32
    %c0_i32_1 = arith.constant 0 : i32
    return %arg1, %c0_i32, %c0_i32_0 : i32, i32, i32
  }
  func.func @transform_17(%arg0: i32, %arg1: i32) -> (i32, i32) {
    %c0_i32 = arith.constant 0 : i32
    %c0_i32_0 = arith.constant 0 : i32
    %c0_i32_1 = arith.constant 0 : i32
    return %c0_i32, %c0_i32_0 : i32, i32
  }
  func.func @transform_18(%arg0: i32, %arg1: i32) -> (i32, i32) {
    %c0_i32 = arith.constant 0 : i32
    %c0_i32_0 = arith.constant 0 : i32
    %c0_i32_1 = arith.constant 0 : i32
    return %c0_i32, %c0_i32_0 : i32, i32
  }
  func.func @transform_19(%arg0: i32, %arg1: i32) -> (i32, i32, i32) {
    %c0_i32 = arith.constant 0 : i32
    %c0_i32_0 = arith.constant 0 : i32
    %c0_i32_1 = arith.constant 0 : i32
    return %arg0, %c0_i32, %c0_i32_0 : i32, i32, i32
  }
}

</mosaic_0001>

<bundles_post_ra>
// kernel: _lambda_.1
= control target key start
LH: loop header
LB: loop body
LE: loop exit
PB: predicated region body
PF: predicated region fallthrough
CT: control target
= control target key end

     0   :  { %s2367_s0 = inlined_call_operand.vmem [shape: f32[16,32], index: 0, kind: input, shape index: {}]   ;;  %s2368_s1 = inlined_call_operand.hbm [shape: f32[8,32], index: 1, kind: input, shape index: {}]   ;;  %s2369_s2 = inlined_call_operand.vmem [shape: f32[16,32], index: 2, kind: input, shape index: {}]   ;;  %s2370_s3 = inlined_call_operand.vmem [shape: f32[1,32], index: 3, kind: input, shape index: {}]   ;;  %s2371_s4 = inlined_call_operand.vmem [shape: f32[1,32], index: 4, kind: input, shape index: {}, may-alias: {4,18}]   ;;  %s2372_s5 = inlined_call_operand.vmem [shape: bf16[2,32,96], index: 5, kind: input, shape index: {}]   ;;  %s2373_s6 = inlined_call_operand.vmem [shape: f32[2,1,96], index: 6, kind: input, shape index: {}]   ;;  %s2374_s7 = inlined_call_operand.vmem [shape: bf16[2,32,32], index: 7, kind: input, shape index: {}]   ;;  %s2375_s8 = inlined_call_operand.vmem [shape: f32[2,1,32], index: 8, kind: input, shape index: {}, may-alias: {8,10,14,16}]   ;;  %s2376_s9 = inlined_call_operand.vmem [shape: f32[2,1,32], index: 9, kind: input, shape index: {}, may-alias: {9,15}]   ;;  %s2377_s10 = inlined_call_operand.vmem [shape: f32[2,1,32], index: 10, kind: input, shape index: {}, may-alias: {8,10,14,16}]   ;;  %s2378_s11 = inlined_call_operand.vmem [shape: bf16[2,32,64], index: 11, kind: input, shape index: {}]   ;;  %s2379_s12 = inlined_call_operand.vmem [shape: f32[2,1,64], index: 12, kind: input, shape index: {}]   ;;  %s2380_s13 = inlined_call_operand.vmem [shape: bf16[2,64,32], index: 13, kind: input, shape index: {}]   ;;  %s2381_s14 = inlined_call_operand.vmem [shape: f32[2,1,32], index: 14, kind: input, shape index: {}, may-alias: {8,10,14,16}]   ;;  %s2382_s15 = inlined_call_operand.vmem [shape: f32[2,1,32], index: 15, kind: input, shape index: {}, may-alias: {9,15}]   ;;  %s2383_s16 = inlined_call_operand.vmem [shape: f32[2,1,32], index: 16, kind: input, shape index: {}, may-alias: {8,10,14,16}]   ;;  %s2384_s17 = inlined_call_operand.hbm [shape: bf16[32,32], index: 17, kind: input, shape index: {}]   ;;  %s2385_s18 = inlined_call_operand.vmem [shape: f32[1,32], index: 18, kind: input, shape index: {}, may-alias: {4,18}]   ;;  %s2386_s19 = inlined_call_operand.hbm [shape: f32[2,1,32], index: 19, kind: output, shape index: {}]  }
   0x1   :  { %2401 = sst [smem:[#allocation25_spill]] %s2367_s0 }
   0x2   :  { %2402 = sst [smem:[#allocation26_spill]] %s2368_s1 }
   0x3   :  { %2403 = sst [smem:[#allocation27_spill]] %s2369_s2 }
   0x4   :  { %2404 = sst [smem:[#allocation28_spill]] %s2370_s3 }
   0x5   :  { %2405 = sst [smem:[#allocation29_spill]] %s2371_s4 }
   0x6   :  { %2406 = sst [smem:[#allocation30_spill]] %s2372_s5 }
   0x7   :  { %2407 = sst [smem:[#allocation31_spill]] %s2374_s7 }
   0x8   :  { %2408 = sst [smem:[#allocation32_spill]] %s2378_s11 }
   0x9   :  { %2409 = sst [smem:[#allocation33_spill]] %s2383_s16 }
   0xa   :  { %2410 = sst [smem:[#allocation34_spill]] %s2384_s17 }
   0xb   :  { %2411 = sst [smem:[#allocation35_spill]] %s2385_s18 }
   0xc   :  { %2412 = sst [smem:[#allocation36_spill]] %s2386_s19 }
   0xd   :  { %24 = vsyncpa [#allocation4], 0 }
   0xe   :  { %25 = vsyncpa [#allocation7], 0 }
   0xf   :  { %26 = vsyncpa [#allocation5], 0 }
  0x10   :  { %28 = vsyncpa [#allocation5 + $0x1], 0  ;;  %s2058_s0 = smov 0   ;;  %s2060_s30 = smov 0  }
  0x11   :  { %s2062_s20 = smov 0   ;;  %s2064_s21 = smov 0  }
  0x12   :  { %s2066_s1 = smov 0   ;;  %s2068_s22 = smov 0  }
  0x13   :  { %s2070_s2 = smov 0   ;;  %s2072_s23 = smov 0  }
  0x14 LB: > { %2413 = sst [smem:[#allocation12_spill]] %s1916_s0  ;;  %s1552_s24 = sadd.s32 4294967295, %s1944_s23   ;;  %s1944_s23 = sphi %s2072_s23, %s34_s23   ;;  %s1940_s2 = sphi %s2070_s2, %s2464_s2   ;;  %s1936_s22 = sphi %s2068_s22, %s2463_s22   ;;  %s1932_s1 = sphi %s2066_s1, %s2462_s1   ;;  %s1928_s21 = sphi %s2064_s21, %s2461_s21   ;;  %s1924_s20 = sphi %s2062_s20, %s2460_s20   ;;  %s1920_s30 = sphi %s2060_s30, %s2466_s30   ;;  %s1916_s0 = sphi %s2058_s0, %s2465_s0  }
  0x15   : > { %2414 = sst [smem:[#allocation13_spill]] %s1924_s20  ;;  %s1553_s25 = sadd.s32 4294967294, %s1944_s23  }
  0x16   : > { %2415 = sst [smem:[#allocation14_spill]] %s1928_s21  ;;  %s43_s3 = sadd.s32 1, %s1936_s22 }
  0x17   : > { %2416 = sst [smem:[#allocation15_spill]] %s1932_s1  ;;  %s46_s26 = sadd.s32 1, %s1940_s2 }
  0x18   : > { %2417 = sst [smem:[#allocation16_spill]] %s1936_s22  ;;  %p44_p0 = scmp.ge.s32.totalorder %s43_s3, 2 }
  0x19   : > { %2418 = sst [smem:[#allocation17_spill]] %s1940_s2  ;;  %s522_s27 = sadd.s32 1, %s1924_s20 }
  0x1a   : > { %2419 = sst [smem:[#allocation18_spill]] %s1944_s23  ;;  %p532_p1 = scmp.ne.s32.totalorder %s1924_s20, %s1920_s30 }
  0x1b   : > { %p533_p2 = scmp.eq.s32.totalorder %s1552_s24, 3  ;;  %s2468_s3 = smov (%p44_p0, %s43_s3), 0 }
  0x1c   : > { %2420 = sst [smem:[#allocation19_spill]] %s2468_s3  ;;  %s2470_s26 = smov (!%p44_p0, %s46_s26), %s1940_s2 }
  0x1d   : > { %p2108_p3 = por %p533_p2, %p532_p1  ;;  %p538_p4 = scmp.ne.s32.totalorder %s1920_s30, %s1916_s0 }
  0x1e   : > { %p48_p5 = scmp.ge.s32.totalorder %s2470_s26, 2  ;;  %p539_p6 = scmp.eq.s32.totalorder %s1553_s25, 3 }
  0x1f   : > { %s2421_s28 = scalar_select %p2108_p3, 1, 0 }
  0x20   : > { %p1554_p7 = scmp.ge.s32.totalorder %s1944_s23, 1  ;;  %p546_p8 = scmp.lt.s32.totalorder %s1944_s23, 5 }
  0x21   : > { %2422 = sst [smem:[#allocation20_spill]] %s2421_s28  ;;  %s2472_s26 = smov (%p48_p5, %s2470_s26), 0 }
  0x22   : > { %2423 = sst [smem:[#allocation21_spill]] %s2472_s26  ;;  %p2118_p9 = por %p539_p6, %p538_p4 }
  0x23   : > { %p2122_p10 = pnand %p1554_p7, %p546_p8  ;;  %s519_s22 = ssub.s32 %s1940_s2, %s2472_s26 }
  0x24   : > { %s2424_s29 = scalar_select %p2118_p9, 1, 0 }
  0x25   : > { %p520_p11 = scmp.eq.s32.totalorder %s519_s22, 0  ;;  %p1658_p12 = pneg %p2122_p10 }
  0x26   : > { %2425 = sst [smem:[#allocation22_spill]] %s2424_s29  ;;  %p2130_p13 = scmp.eq.s32.totalorder %s1552_s24, 0 }
  0x27   : > { %s2428_s28 = sld [smem:[#allocation26_spill]]  ;;  %s1946_s29 = smov [#allocation3]  }
  0x28   : > { %s2138_s18 = scalar_select %p520_p11, %s1924_s20, %s522_s27  }
  0x29   : > { %s560_s4 = sshll.u32 %s1946_s29, 4  ;;  %p1659_p0 = pnand %p2130_p13, %p1658_p12  ;;  %s561_s4 = int_to_ptr.vmem [resolvable:$true] %s560_s4 }
  0x2a   : > { %2429 = sst [smem:[#allocation23_spill]] %s2138_s18  ;;  %s1947_s2 = smov [#allocation6]  }
  0x2b   : > { %s2430_s17 = sld [smem:[#allocation34_spill]]  ;;  %s577_s16 = sshll.u32 %s1947_s2, 4  ;;  %s578_s16 = int_to_ptr.vmem [resolvable:$true] %s577_s16 }
  0x2c   : > { %s1948_s0 = smov 64   ;;  %s1949_s23 = smov 4  }
  0x2d   : > { %s558_s19 = sshll.u32 %s2428_s28, 4  ;;  %s559_s19 = int_to_ptr.hbm [resolvable:$true] %s558_s19 }
  0x2e   : > { %1661 = dma.hbm_to_vmem [thread:$0]  (!%p1659_p0), %s559_s19, 128, %s561_s4, [#allocation4]  }
  0x2f   : > { %690 = sbr.rel (%p2122_p10) target bundleno = 2365 (0x93d), region = 96 }
  0x31   : > { %s575_s24 = sshll.u32 %s2430_s17, 4  ;;  %s576_s24 = int_to_ptr.hbm [resolvable:$true] %s575_s24 }
  0x32   : > { %1664 = dma.hbm_to_vmem [thread:$0]  (!%p1659_p0), %s576_s24, 256, %s578_s16, [#allocation7], %s1948_s0, %s1948_s0, %s1949_s23  }
  0x34   : > { %1903 = dma.done.wait (%p2130_p13), [#allocation4], 128  }
  0x35   : > { %1905 = vsyncadd (%p2130_p13), [#allocation4], 4294967168 }
  0x36   : > { %1907 = dma.done.wait (%p2130_p13), [#allocation7], 256  }
  0x37   : > { %1909 = vsyncadd (%p2130_p13), [#allocation7], 4294967040  ;;  %p798_p1 = scmp.lt.s32.totalorder %s1932_s1, 1  ;;  %p806_p2 = scmp.lt.s32.totalorder %s1928_s21, 1 }
  0x38   : > { %s2431_s27 = sld [smem:[#allocation25_spill]] }
  0x39   : > { %s799_s16 = scalar_select %p798_p1, %s1932_s1, 1 }
  0x3a   : > { %s2160_s19 = scalar_select %p806_p2, %s1928_s21, 1 }
  0x3b   : > { %s1561_s2 = sshll.u32 %s799_s16, 3  ;;  %s2432_s22 = sld [smem:[#allocation27_spill]] }
  0x3c   : > { %s1632_s0 = sshll.u32 %s2160_s19, 4  ;;  %s2433_s5 = sld [smem:[#allocation30_spill]] }
  0x3d   : > { %s2434_s7 = sld [smem:[#allocation31_spill]]  ;;  %s843_s4 = scalar_lea.vmem %s2381_s14, %s2160_s19 }
  0x3e   : > { %s801_s28 = scalar_lea.vmem %s2431_s27, %s1561_s2  ;;  %s2436_s11 = sld [smem:[#allocation32_spill]] }
  0x3f   : > { %s846_s18 = scalar_lea.vmem %s2382_s15, %s2160_s19  ;;  %s2438_s21 = sand.u32 1, %s1920_s30  }
  0x40   : > { %s2224_s16 = scalar_lea.vmem [#allocation8], %s2438_s21 }
  0x41   : > { %s805_s24 = scalar_lea.vmem %s2432_s22, %s1561_s2  ;;  %s2437_s22 = sld [smem:[#allocation33_spill]] }
  0x42   : > { %s2176_s1 = scalar_lea.vmem %s2433_s5, %s1632_s0 }
  0x43   : > { %s2181_s3 = scalar_lea.vmem %s2434_s7, %s1632_s0  ;;  %s2439_s7 = sld [smem:[#allocation14_spill]] }
  0x44   : > { %2435 = sst [smem:[#allocation24_spill]] %s2181_s3  ;;  %s2198_s5 = scalar_lea.vmem %s2436_s11, %s1632_s0 }
  0x45   : > { %s1635_s3 = sshll.u32 %s2160_s19, 5 }
  0x46   : > { %s2208_s29 = scalar_lea.vmem %s2380_s13, %s1635_s3 }
  0x47   : > { %s849_s11 = scalar_lea.vmem %s2437_s22, %s2160_s19 }
  0x49   : > { %p1571_p4 = scmp.ne.s32.totalorder %s2439_s7, 0 }
  0x4a   : > { %s2441_s22 = sld [smem:[#allocation29_spill]] (!%p1571_p4) }
  0x4b   : > { %854 = sbr.rel (%p1571_p4) target bundleno = 354 (0x162), region = 108 }
  0x50   : > { %v855_v0 = vld [vmem:[%s801_s28] sm:$0xff]  ;;  %v856_v1 = vld [vmem:[#allocation3] sm:$0xff]  ;;  %vm862_vm0 = vcmask 261120   ;;  %v1950_v6 = vmov 32.0   ;;  %s2440_s28 = sld [smem:[#allocation28_spill]] }
  0x51   : > { %v858_v2 = vld [vmem:[%s805_s24] sm:$0xff]  ;;  %v857_v3 = vadd.f32 %v856_v1, %v855_v0  ;;  %1752 = vrcp.f32 %v1950_v6 }
  0x52   : > { %v1751_v29 = vld [vmem:[%s2441_s22] ss:$0 sm:$0xff] }
  0x53   : > { %v859_v4 = vadd.f32 %v858_v2, %v857_v3 }
  0x55   : > { %v863_v5 = vsel %vm862_vm0, %v859_v4, 0.0 }
  0x56   : > { %864 = vadd.xlane.f32.xlu0 %v863_v5  ;;  %v1750_v27 = vld [vmem:[%s2440_s28] ss:$0 sm:$0xff] }
  0x57   : > { %v1753_v7 = vpop.eup %1752 }
  0x58   : > { %v867_v8 = vmul.f32 32.0, %v1753_v7  ;;  %vm871_vm1 = vweird.f32 %v1753_v7 }
  0x5a   : > { %v868_v9 = vsub.f32 1.0, %v867_v8 }
  0x5c   : > { %v869_v10 = vmul.f32 %v1753_v7, %v868_v9 }
  0x5e   : > { %v870_v11 = vadd.f32 %v1753_v7, %v869_v10 }
  0x60   : > { %v872_v12 = vsel %vm871_vm1, %v1753_v7, %v870_v11 }
  0xc9   : > { %v865_v13 = vpop.xlane.xlu0 %864 }
  0xca   : > { %v873_v14 = vmul.f32 %v872_v12, %v865_v13 }
  0xcc   : > { %v874_v15 = vsub.f32 %v859_v4, %v873_v14 }
  0xce   : > { %v875_v16 = vmul.f32 %v874_v15, %v874_v15 }
  0xd0   : > { %v876_v17 = vsel %vm862_vm0, %v875_v16, 0.0 }
  0xd1   : > { %877 = vadd.xlane.f32.xlu0 %v876_v17 }
 0x144   : > { %v878_v18 = vpop.xlane.xlu0 %877 }
 0x145   : > { %v879_v19 = vmul.f32 %v878_v18, %v872_v12 }
 0x147   : > { %v880_v20 = vadd.f32 1e-12, %v879_v19 }
 0x149   : > { %1754 = vrsqrt.f32 %v880_v20  ;;  %vm887_vm3 = vweird.f32 %v880_v20 }
 0x14f   : > { %v1755_v21 = vpop.eup %1754 }
 0x150   : > { %v882_v22 = vmul.f32 %v1755_v21, %v880_v20  ;;  %vm888_vm2 = vweird.f32 %v1755_v21 }
 0x151   : > { %vm889_vm4 = vmor %vm887_vm3, %vm888_vm2 }
 0x152   : > { %v883_v23 = vmul.f32 %v1755_v21, %v882_v22 }
 0x154   : > { %v884_v24 = vmul.f32 0.5, %v883_v23 }
 0x156   : > { %v885_v25 = vsub.f32 1.5, %v884_v24 }
 0x158   : > { %v886_v26 = vmul.f32 %v1755_v21, %v885_v25 }
 0x15a   : > { %v890_v28 = vsel %vm889_vm4, %v1755_v21, %v886_v26 }
 0x15b   : > { %v891_v30 = vmul.f32 %v890_v28, %v874_v15 }
 0x15d   : > { %v895_v31 = vmul.f32 %v1750_v27, %v891_v30 }
 0x15f   : > { %v899_v32 = vadd.f32 %v1751_v29, %v895_v31 }
 0x161   : > { %900 = vst.msk [vmem:[#allocation2] sm:$0xff] %vm862_vm0, %v899_v32 }
 0x162 PF: > { %v1637_v33 = vld [vmem:[%s2176_s1 + $0x8] sm:$0xff]  ;;  %v1636_v34 = vld [vmem:[%s2176_s1] sm:$0xff]  ;;  %vm923_vm5 = vcmask 261120   ;;  %s2442_s2 = scalar_lea.vmem %s2373_s6, %s2160_s19  ;;  %s1951_s1 = smov 96   ;;  %vm948_vm6 = vcmask 130048   ;;  %vm986_vm7 = vcmask 1043456  }
 0x163   : > { %933 = vmatpush.bf16.msra.mxu0 %v1637_v33  ;;  %v1756_v37 = vld [vmem:[%s2442_s2] ss:$0 sm:$0xff]  ;;  %s1952_s25 = smov 112   ;;  %s1953_s23 = smov 80   ;;  %vm968_vm8 = vcmask 64512   ;;  %v1957_v32 = vmov 32.0  }
 0x164   : > { %s1954_s0 = smov 64   ;;  %s1955_s20 = smov 48   ;;  %vm1227_vm13 = vcmask 523264  }
 0x165   : > { %s2443_s21 = sld [smem:[#allocation24_spill]]  ;;  %s1956_s7 = smov 16  }
 0x166   : > { %s2444_s24 = scalar_lea.vmem %s2375_s8, %s2160_s19  ;;  %s2445_s22 = scalar_lea.vmem %s2376_s9, %s2160_s19 }
 0x167   : > { %934 = vmatpush.bf16.msra.mxu0 %v1636_v34  ;;  %v1757_v26 = vld [vmem:[%s2444_s24] ss:$0 sm:$0xff]  ;;  %s2446_s2 = scalar_lea.vmem %s2377_s10, %s2160_s19  ;;  %s2449_s28 = sld [smem:[#allocation14_spill]] }
 0x168   : > { %v2238_v35 = vld [vmem:[#allocation2] sm:$0xff] }
 0x169   : > { %v902_v36 = vpack.c.bf16 %v2238_v35, %v2238_v35 }
 0x16b   : > { %1580 = vmatmul.msk.bf16.vlgmr.msra.gmra.mxu0 %vm923_vm5, %v902_v36  ;;  %v1639_v17 = vld [vmem:[%s2443_s21 + $0x8] sm:$0xff]  ;;  %v1638_v18 = vld [vmem:[%s2443_s21] sm:$0xff] }
 0x16c   : > { %1097 = vmatpush.bf16.msrb.mxu0 %v1639_v17 }
 0x16d   : > { %p1620_p5 = scmp.ne.s32.totalorder %s2449_s28, 1 }
 0x170   : > { %1098 = vmatpush.bf16.msrb.mxu0 %v1638_v18 }
 0x1e8   : > { %v936_v38 = vpop.f32.mrf.mxu0 }
 0x1e9   : > { %v937_v39 = vadd.f32 %v1756_v37, %v936_v38 }
 0x1eb   : > { %v940_v40 = vmul.f32 0.25, %v937_v39  ;;  %v942_v41 = vpack.c.bf16 %v937_v39, %v937_v39 }
 0x1ed   : > { %v941_v42 = vpack.c.bf16 %v940_v40, %v940_v40  ;;  %v944_v43 = vunpack.c.l.b16 %v942_v41 }
 0x1ef   : > { %v945_v44 = vpack.c.b16 %v944_v43, %v944_v43  ;;  %v1004_v45 = vunpack.c.l.b16 %v941_v42 }
 0x1f0   : > { %v938_v46 = vpop.f32.mrf.mxu0 }
 0x1f1   : > { %946 = vrot.lane.b32.xlu0 %v945_v44, %s1951_s1  ;;  %v1005_v47 = vpack.c.b16 %v1004_v45, %v1004_v45  ;;  %v1640_v45 = vld [vmem:[%s2198_s5] sm:$0xff] }
 0x1f3   : > { %1006 = vrot.lane.b32.xlu1 %v1005_v47, %s1952_s25 }
 0x1f9   : > { %1008 = vrot.lane.b32.xlu0 %v945_v44, %s1953_s23  ;;  %s2447_s23 = scalar_lea.vmem %s2379_s12, %s2160_s19  ;;  %s2450_s19 = sld [smem:[#allocation35_spill]] (!%p1620_p5) }
 0x201   : > { %981 = vrot.lane.b32.xlu0 %v945_v44, %s1954_s0 }
 0x209   : > { %1041 = vrot.lane.b32.xlu0 %v945_v44, %s1955_s20  ;;  %v1641_v44 = vld [vmem:[%s2198_s5 + $0x8] sm:$0xff] }
 0x263   : > { %v947_v48 = vpop.permute.xlu0 %946 }
 0x264   : > { %v953_v49 = vsel %vm948_vm6, %v947_v48, 0 }
 0x265   : > { %962 = vmatpush.bf16.xpose.msra.mxu1 %v953_v49  ;;  %v1007_v52 = vpop.permute.xlu1 %1006 }
 0x26b   : > { %v1009_v50 = vpop.permute.xlu0 %1008 }
 0x26c   : > { %1581 = vmatmul.msk.bf16.vlgmr.msra.gmra.mxu1 %vm948_vm6, %v941_v42  ;;  %v1014_v51 = vsel %vm948_vm6, %v1009_v50, 0 }
 0x26d   : > { %1023 = vmatpush.bf16.xpose.msra.mxu3 %v1014_v51  ;;  %1174 = vmatpush.bf16.msrb.mxu1 %v1641_v44 }
 0x271   : > { %1175 = vmatpush.bf16.msrb.mxu1 %v1640_v45 }
 0x273   : > { %v982_v53 = vpop.permute.xlu0 %981 }
 0x274   : > { %1583 = vmatmul.msk.bf16.vlgmr.msra.gmra.mxu3 %vm948_vm6, %v1007_v52  ;;  %v988_v54 = vsel %vm986_vm7, %v982_v53, 0 }
 0x275   : > { %997 = vmatpush.bf16.msra.mxu2 %v988_v54 }
 0x27b   : > { %v1042_v55 = vpop.permute.xlu0 %1041 }
 0x27c   : > { %v1047_v56 = vsel %vm986_vm7, %v1042_v55, 0  ;;  %v1758_v55 = vld [vmem:[%s2445_s22] ss:$0 sm:$0xff] }
 0x27d   : > { %1056 = vmatpush.bf16.msrb.mxu2 %v1047_v56 }
 0x2e9   : > { %v964_v57 = vpop.f32.mrf.mxu1 }
 0x2ea   : > { %v969_v58 = vsel %vm968_vm8, %v964_v57, -inf }
 0x2eb   : > { %970 = vmax.xlane.f32.xlu1 %v969_v58  ;;  %v1759_v58 = vld [vmem:[%s2446_s2] ss:$0 sm:$0xff] }
 0x2f1   : > { %v966_v59 = vpop.f32.mrf.mxu1 }
 0x2f7   : > { %v1025_v60 = vpop.f32.mrf.mxu3 }
 0x2f8   : > { %v1029_v61 = vsel %vm968_vm8, %v1025_v60, -inf }
 0x2f9   : > { %1030 = vmax.xlane.f32.xlu2 %v1029_v61 }
 0x2ff   : > { %v1027_v62 = vpop.f32.mrf.mxu3 }
 0x300   : > { %v1645_v62 = vld [vmem:[%s2208_s29 + $0x18] sm:$0xff] }
 0x301   : > { %1235 = vmatpush.bf16.msrb.mxu3 %v1645_v62 }
 0x35e   : > { %v971_v63 = vpop.xlane.xlu1 %970 }
 0x35f   : > { %v972_v0 = vsub.f32 %v964_v57, %v971_v63  ;;  %v1644_v63 = vld [vmem:[%s2208_s29 + $0x10] sm:$0xff] }
 0x360   : > { %1236 = vmatpush.bf16.msrb.mxu3 %v1644_v63 }
 0x361   : > { %v973_v1 = vmul.f32 1.442695, %v972_v0  ;;  %v1643_v0 = vld [vmem:[%s2208_s29 + $0x8] sm:$0xff] }
 0x363   : > { %1764 = vpow2.f32 %v973_v1  ;;  %v1642_v1 = vld [vmem:[%s2208_s29] sm:$0xff] }
 0x364   : > { %1237 = vmatpush.bf16.msrb.mxu3 %v1643_v0 }
 0x368   : > { %1238 = vmatpush.bf16.msrb.mxu3 %v1642_v1 }
 0x369   : > { %v1765_v2 = vpop.eup %1764 }
 0x36a   : > { %v975_v3 = vsel %vm968_vm8, %v1765_v2, 0.0 }
 0x36b   : > { %976 = vadd.xlane.f32.xlu2 %v975_v3 }
 0x36c   : > { %v1031_v4 = vpop.xlane.xlu2 %1030 }
 0x36d   : > { %v1032_v5 = vsub.f32 %v1025_v60, %v1031_v4 }
 0x36f   : > { %v1033_v6 = vmul.f32 1.442695, %v1032_v5 }
 0x371   : > { %1766 = vpow2.f32 %v1033_v6 }
 0x377   : > { %v1767_v7 = vpop.eup %1766 }
 0x378   : > { %v1035_v8 = vsel %vm968_vm8, %v1767_v7, 0.0 }
 0x379   : > { %1036 = vadd.xlane.f32.xlu2 %v1035_v8 }
 0x3de   : > { %v977_v9 = vpop.xlane.xlu2 %976 }
 0x3df   : > { %1768 = vrcp.f32 %v977_v9 }
 0x3e5   : > { %v1769_v10 = vpop.eup %1768 }
 0x3e6   : > { %v979_v11 = vmul.f32 %v1769_v10, %v1765_v2  ;;  %v1760_v2 = vld [vmem:[%s2447_s23] ss:$0 sm:$0xff] }
 0x3e8   : > { %v980_v12 = vpack.c.bf16 %v979_v11, %v979_v11 }
 0x3ea   : > { %1582 = vmatmul.msk.bf16.vlgmr.msra.gmra.mxu2 %vm968_vm8, %v980_v12 }
 0x3ec   : > { %v1037_v13 = vpop.xlane.xlu2 %1036 }
 0x3ed   : > { %1770 = vrcp.f32 %v1037_v13 }
 0x3ee   : > { %1772 = vrcp.f32 %v1957_v32 }
 0x3f3   : > { %v1771_v14 = vpop.eup %1770 }
 0x3f4   : > { %v1039_v15 = vmul.f32 %v1771_v14, %v1767_v7  ;;  %v1773_v33 = vpop.eup %1772 }
 0x3f5   : > { %v1111_v34 = vmul.f32 32.0, %v1773_v33  ;;  %vm1115_vm9 = vweird.f32 %v1773_v33 }
 0x3f6   : > { %v1040_v16 = vpack.c.bf16 %v1039_v15, %v1039_v15 }
 0x3f7   : > { %v1112_v36 = vsub.f32 1.0, %v1111_v34 }
 0x3f9   : > { %v1113_v37 = vmul.f32 %v1773_v33, %v1112_v36 }
 0x3fa   : > { %1584 = vmatmul.msk.bf16.vlgmr.msrb.gmra.mxu2 %vm968_vm8, %v1040_v16  ;;  %v1761_v16 = vld [vmem:[%s843_s4] ss:$0 sm:$0xff] }
 0x3fb   : > { %v1114_v38 = vadd.f32 %v1773_v33, %v1113_v37  ;;  %v1762_v37 = vld [vmem:[%s846_s18] ss:$0 sm:$0xff] }
 0x3fd   : > { %v2269_v39 = vsel %vm1115_vm9, %v1773_v33, %v1114_v38 }
 0x46d   : > { %v999_v19 = vpop.f32.mrf.mxu2 }
 0x475   : > { %v1001_v20 = vpop.f32.mrf.mxu2 }
 0x47d   : > { %v1058_v21 = vpop.f32.mrf.mxu2 }
 0x47e   : > { %1063 = vrot.lane.b32.xlu2 %v1058_v21, %s1956_s7 }
 0x485   : > { %v1060_v22 = vpop.f32.mrf.mxu2 }
 0x4d8   : > { %v1064_v23 = vpop.permute.xlu2 %1063 }
 0x4d9   : > { %v1066_v24 = vsel %vm948_vm6, %v999_v19, %v1064_v23 }
 0x4da   : > { %v1067_v25 = vpack.c.bf16 %v1066_v24, %v1066_v24 }
 0x4dc   : > { %1593 = vmatmul.msk.bf16.vlgmr.msrb.gmra.mxu0 %vm923_vm5, %v1067_v25 }
 0x559   : > { %v1100_v27 = vpop.f32.mrf.mxu0 }
 0x55a   : > { %v1101_v28 = vadd.f32 %v1757_v26, %v1100_v27 }
 0x55c   : > { %v1104_v29 = vadd.f32 %v1101_v28, %v2238_v35 }
 0x55e   : > { %v1107_v30 = vsel %vm923_vm5, %v1104_v29, 0.0 }
 0x55f   : > { %1108 = vadd.xlane.f32.xlu0 %v1107_v30 }
 0x561   : > { %v1102_v31 = vpop.f32.mrf.mxu0 }
 0x5d2   : > { %v1109_v40 = vpop.xlane.xlu0 %1108 }
 0x5d3   : > { %v1117_v41 = vmul.f32 %v2269_v39, %v1109_v40 }
 0x5d5   : > { %v1118_v35 = vsub.f32 %v1104_v29, %v1117_v41 }
 0x5d7   : > { %v1119_v42 = vmul.f32 %v1118_v35, %v1118_v35 }
 0x5d9   : > { %v1120_v43 = vsel %vm923_vm5, %v1119_v42, 0.0 }
 0x5da   : > { %1121 = vadd.xlane.f32.xlu2 %v1120_v43 }
 0x64d   : > { %v1122_v46 = vpop.xlane.xlu2 %1121 }
 0x64e   : > { %v1123_v47 = vmul.f32 %v1122_v46, %v2269_v39 }
 0x650   : > { %v1124_v48 = vadd.f32 1e-12, %v1123_v47 }
 0x652   : > { %1774 = vrsqrt.f32 %v1124_v48  ;;  %vm1131_vm11 = vweird.f32 %v1124_v48 }
 0x658   : > { %v1775_v49 = vpop.eup %1774 }
 0x659   : > { %v1126_v50 = vmul.f32 %v1775_v49, %v1124_v48  ;;  %vm1132_vm10 = vweird.f32 %v1775_v49 }
 0x65a   : > { %vm1133_vm12 = vmor %vm1131_vm11, %vm1132_vm10 }
 0x65b   : > { %v1127_v51 = vmul.f32 %v1775_v49, %v1126_v50 }
 0x65d   : > { %v1128_v52 = vmul.f32 0.5, %v1127_v51 }
 0x65f   : > { %v1129_v53 = vsub.f32 1.5, %v1128_v52 }
 0x661   : > { %v1130_v54 = vmul.f32 %v1775_v49, %v1129_v53 }
 0x663   : > { %v1134_v56 = vsel %vm1133_vm12, %v1775_v49, %v1130_v54 }
 0x664   : > { %v1135_v57 = vmul.f32 %v1134_v56, %v1118_v35 }
 0x666   : > { %v1139_v59 = vmul.f32 %v1758_v55, %v1135_v57 }
 0x668   : > { %v1143_v60 = vadd.f32 %v1759_v58, %v1139_v59 }
 0x66a   : > { %v1144_v61 = vpack.c.bf16 %v1143_v60, %v1143_v60 }
 0x66c   : > { %1602 = vmatmul.msk.bf16.vlgmr.msrb.gmra.mxu1 %vm923_vm5, %v1144_v61 }
 0x6e9   : > { %v1177_v3 = vpop.f32.mrf.mxu1 }
 0x6ea   : > { %v1178_v4 = vadd.f32 %v1760_v2, %v1177_v3 }
 0x6ec   : > { %v1182_v5 = vmul.f32 0.044715, %v1178_v4  ;;  %v1181_v12 = vmul.f32 0.5, %v1178_v4 }
 0x6ee   : > { %v1183_v6 = vmul.f32 %v1182_v5, %v1178_v4 }
 0x6f0   : > { %v1184_v7 = vmul.f32 %v1183_v6, %v1178_v4 }
 0x6f1   : > { %v1179_v8 = vpop.f32.mrf.mxu1 }
 0x6f2   : > { %v1185_v9 = vadd.f32 %v1184_v7, %v1178_v4 }
 0x6f4   : > { %v1186_v10 = vmul.f32 0.7978846, %v1185_v9 }
 0x6f6   : > { %1776 = vtanh.f32 %v1186_v10 }
 0x6fc   : > { %v1777_v11 = vpop.eup %1776 }
 0x6fd   : > { %v1188_v13 = vadd.f32 1.0, %v1777_v11 }
 0x6ff   : > { %v1189_v14 = vmul.f32 %v1188_v13, %v1181_v12 }
 0x701   : > { %v1190_v15 = vpack.c.bf16 %v1189_v14, %v1189_v14 }
 0x703   : > { %1619 = vmatmul.msk.bf16.vlgmr.msrb.gmra.mxu3 %vm1227_vm13, %v1190_v15 }
 0x786   : > { %v1240_v17 = vpop.f32.mrf.mxu3 }
 0x787   : > { %v1241_v18 = vadd.f32 %v1761_v16, %v1240_v17 }
 0x789   : > { %v1244_v19 = vadd.f32 %v1241_v18, %v1143_v60 }
 0x78b   : > { %v1247_v20 = vsel %vm923_vm5, %v1244_v19, 0.0 }
 0x78c   : > { %1248 = vadd.xlane.f32.xlu1 %v1247_v20 }
 0x78e   : > { %v1242_v21 = vpop.f32.mrf.mxu3 }
 0x7ff   : > { %v1249_v22 = vpop.xlane.xlu1 %1248 }
 0x800   : > { %v1250_v23 = vmul.f32 %v1249_v22, %v2269_v39 }
 0x802   : > { %v1251_v24 = vsub.f32 %v1244_v19, %v1250_v23 }
 0x804   : > { %v1252_v25 = vmul.f32 %v1251_v24, %v1251_v24 }
 0x806   : > { %v1253_v26 = vsel %vm923_vm5, %v1252_v25, 0.0 }
 0x807   : > { %1254 = vadd.xlane.f32.xlu1 %v1253_v26 }
 0x87a   : > { %v1255_v27 = vpop.xlane.xlu1 %1254 }
 0x87b   : > { %v1256_v28 = vmul.f32 %v1255_v27, %v2269_v39  ;;  %v1763_v39 = vld [vmem:[%s849_s11] ss:$0 sm:$0xff] }
 0x87d   : > { %v1257_v29 = vadd.f32 1e-12, %v1256_v28 }
 0x87f   : > { %1778 = vrsqrt.f32 %v1257_v29  ;;  %vm1264_vm15 = vweird.f32 %v1257_v29 }
 0x885   : > { %v1779_v30 = vpop.eup %1778 }
 0x886   : > { %v1259_v31 = vmul.f32 %v1779_v30, %v1257_v29  ;;  %vm1265_vm14 = vweird.f32 %v1779_v30 }
 0x887   : > { %vm1266_vm0 = vmor %vm1264_vm15, %vm1265_vm14 }
 0x888   : > { %v1260_v32 = vmul.f32 %v1779_v30, %v1259_v31 }
 0x88a   : > { %v1261_v33 = vmul.f32 0.5, %v1260_v32 }
 0x88c   : > { %v1262_v34 = vsub.f32 1.5, %v1261_v33 }
 0x88e   : > { %v1263_v36 = vmul.f32 %v1779_v30, %v1262_v34 }
 0x890   : > { %v1267_v38 = vsel %vm1266_vm0, %v1779_v30, %v1263_v36 }
 0x891   : > { %v1268_v40 = vmul.f32 %v1267_v38, %v1251_v24 }
 0x893   : > { %v1272_v41 = vmul.f32 %v1762_v37, %v1268_v40  ;;  %1281 = sbr.rel (%p1620_p5) target bundleno = 2344 (0x928), region = 112 }
 0x895   : > { %v1276_v35 = vadd.f32 %v1763_v39, %v1272_v41 }
 0x897   : > { %1277 = vst.msk [vmem:[#allocation2] sm:$0xff] %vm923_vm5, %v1276_v35 }
 0x898   : > { %v1647_v42 = vld [vmem:[#allocation6 + $0x8] sm:$0xff]  ;;  %v1646_v43 = vld [vmem:[#allocation6] sm:$0xff]  ;;  %v1282_v44 = vpack.c.bf16 %v1276_v35, %v1276_v35  ;;  %v1287_v45 = vld [vmem:[%s2450_s19] sm:$0x1]  ;;  %vm1317_vm1 = vcmask 253952  }
 0x899   : > { %1309 = vmatpush.bf16.msra.mxu0 %v1647_v42 }
 0x89d   : > { %1310 = vmatpush.bf16.msra.mxu0 %v1646_v43 }
 0x8a0   : > { %1629 = vmatmul.msk.bf16.vlgmr.msra.gmra.mxu0 %vm923_vm5, %v1282_v44 }
 0x91d   : > { %v1312_v46 = vpop.f32.mrf.mxu0 }
 0x91e   : > { %v1313_v47 = vadd.f32 %v1312_v46, %v1287_v45 }
 0x920   : > { %1780 = vtanh.f32 %v1313_v47 }
 0x925   : > { %v1314_v48 = vpop.f32.mrf.mxu0 }
 0x926   : > { %v1781_v49 = vpop.eup %1780 }
 0x927   : > { %1318 = vst.msk [vmem:[%s2224_s16] sm:$0x1] %vm1317_vm1, %v1781_v49 }
 0x928 PF: > { %s2451_s11 = sld [smem:[#allocation15_spill]]  ;;  %s1330_s1 = sshll.u32 %s2224_s16, 4  ;;  %s1331_s1 = int_to_ptr.vmem [resolvable:$true] %s1330_s1 }
 0x929   : > { %s2452_s22 = sld [smem:[#allocation36_spill]]  ;;  %s2455_s23 = sand.u32 1, %s1920_s30  }
 0x92a   : > { %s1320_s29 = scalar_lea.sflag [#allocation5], %s2455_s23 }
 0x92f   : > { %s2453_s26 = smov %s2452_s22  ;;  %s1328_s2 = scalar_lea.hbm %s2452_s22, %s2451_s11 }
 0x930   : > { %s1332_s25 = sshll.u32 %s1328_s2, 4  ;;  %s1862_s7 = scalar_lea.hbm %s2453_s26, 2  ;;  %s1333_s25 = int_to_ptr.hbm [resolvable:$true] %s1332_s25 }
 0x931   : > { %s1856_s0 = sshra.s32 %s1333_s25, 4  ;;  %s1857_s0 = int_to_ptr.hbm [resolvable:$true] %s1856_s0 }
 0x932   : > { %s1858_s4 = scalar_lea.hbm %s1857_s0, 1  ;;  %p1863_p10 = scmp.lt.s32.totalorder %s1857_s0, %s2453_s26 }
 0x933   : > { %p1859_p6 = scmp.ne.s32.totalorder %s1857_s0, %s1858_s4  ;;  %p1864_p11 = scmp.lt.s32.totalorder %s1862_s7, %s1858_s4 }
 0x935   : > { %p1860_p7 = pnand %p1859_p6, %p2108_p3  ;;  %p1865_p12 = por %p1864_p11, %p1863_p10 }
 0x937   : > { %p1861_p8 = pneg %p1860_p7 }
 0x939   : > { %p1866_p13 = pnand %p1865_p12, %p1861_p8 }
 0x93b   : > { %1869 = shalt.err (!%p1866_p13)
}
 0x93c   : > { %1656 = dma.vmem_to_hbm [thread:$0]  (%p2108_p3), %s1331_s1, 16, %s1333_s25, %s1320_s29  }
 0x93d PF: > { %s2456_s16 = sld [smem:[#allocation18_spill]] }
 0x93e   : > { %s2457_s18 = sld [smem:[#allocation12_spill]] }
 0x943   : > { %p1673_p0 = scmp.ge.s32.totalorder %s2456_s16, 2 }
 0x944   : > { %s1344_s19 = sand.u32 1, %s2457_s18  }
 0x945   : > { %p1666_p1 = pnand %p1673_p0, %p2118_p9  ;;  %s1345_s11 = scalar_lea.sflag [#allocation5], %s1344_s19 }
 0x947   : > { %p1667_p2 = pneg %p1666_p1 }
 0x949   : > { %1911 = dma.done.wait (%p1667_p2), %s1345_s11, 16  }
 0x94a   : > { %1913 = vsyncadd (%p1667_p2), %s1345_s11, 4294967280  ;;  %s34_s23 = sadd.s32 1, %s2456_s16   ;;  %s2459_s5 = sld [smem:[#allocation13_spill]] }
 0x94b   : > { %p31_p4 = scmp.ge.s32.totalorder %s34_s23, 6   ;;  %s2460_s20 = sld [smem:[#allocation23_spill]] }
 0x94c   : > { %s2461_s21 = sld [smem:[#allocation16_spill]]  ;;  %s2465_s0 = smov %s1920_s30 }
 0x94d   : > { %s2462_s1 = sld [smem:[#allocation17_spill]]  ;;  %33 = sbr.rel (!%p31_p4) target bundleno = 20 (0x14), region = 187 }
 0x94e   : > { %s2463_s22 = sld [smem:[#allocation19_spill]] }
 0x94f   : > { %s2464_s2 = sld [smem:[#allocation21_spill]] }
 0x950   : > { %s2466_s30 = smov %s2459_s5 }
 0x952   :  { %1350 = vsyncpa [#allocation4], 1 }
 0x953   :  { %1352 = vsyncpa [#allocation4 + $0x1], 1 }
 0x954   :  { %1353 = vsyncpa [#allocation7], 1 }
 0x955   :  { %1354 = vsyncpa [#allocation5], 1 }
 0x956   :  { %1356 = vsyncpa [#allocation5 + $0x1], 1 }

</bundles_post_ra>
